<compile_context>
chip_gen: v6e
topology: v6e:2x2x1
jax: 0.10.0
libtpu: 0.0.40
codegen_flags: <defaults>
</compile_context>

<pallas_src>
import jax
import jax.numpy as jnp
from jax.experimental import pallas as pl
from jax.experimental.pallas import tpu as pltpu


def _layernorm(v, g, b, eps=1e-5):
    mu = jnp.mean(v, axis=-1, keepdims=True)
    var = jnp.mean(jnp.square(v - mu), axis=-1, keepdims=True)
    return (v - mu) * jax.lax.rsqrt(var + eps) * g + b


def transformer_layer_kernel(xq_ref, xf_ref, ln1g_ref, ln1b_ref, wqkv_ref, wo_ref,
                             bo_ref, ln2g_ref, ln2b_ref, w1_ref, b1_ref, w2_ref,
                             b2_ref, o_ref):
    heads, dim_head, _ = wo_ref.shape
    block_q = xq_ref.shape[1]
    n = xf_ref.shape[1]
    cdt = wqkv_ref.dtype                      # matmul compute dtype (bf16 by default)
    scale = dim_head ** -0.5

    xq = xq_ref[0]                            # (block_q, dim) f32 — query tile
    xf = xf_ref[0]                            # (n, dim)       f32 — full row (for K/V)

    # ---- PreNorm + Attention + residual ----
    hq = _layernorm(xq, ln1g_ref[...], ln1b_ref[...]).astype(cdt)
    hf = _layernorm(xf, ln1g_ref[...], ln1b_ref[...]).astype(cdt)

    # q/k/v split on the leading axis of wqkv (free index), lane-dense (dim, inner) GEMMs.
    q = jnp.dot(hq, wqkv_ref[0], preferred_element_type=jnp.float32) * scale
    k = jnp.dot(hf, wqkv_ref[1], preferred_element_type=jnp.float32)
    v = jnp.dot(hf, wqkv_ref[2], preferred_element_type=jnp.float32)

    # Heads become a leading batch dim -> single batched MXU contractions, no concat.
    q3 = jnp.swapaxes(q.reshape(block_q, heads, dim_head), 0, 1).astype(cdt)  # (h, q, d)
    k3 = jnp.swapaxes(k.reshape(n, heads, dim_head), 0, 1).astype(cdt)        # (h, k, d)
    v3 = jnp.swapaxes(v.reshape(n, heads, dim_head), 0, 1).astype(cdt)        # (h, k, d)

    # TODO(synk): optional boolean attention mask (masked_fill with -finfo.max) is not
    # implemented; only mask=None is supported.
    dots = jnp.einsum('hqd,hkd->hqk', q3, k3, preferred_element_type=jnp.float32)
    m = jnp.max(dots, axis=-1, keepdims=True)
    e = jnp.exp(dots - m)
    p = e * pl.reciprocal(jnp.sum(e, axis=-1, keepdims=True), approx=True)
    ctx = jnp.einsum('hqk,hkd->hqd', p.astype(cdt), v3,
                     preferred_element_type=jnp.float32)

    # Per-head output projection summed over heads -> avoids (h,q,d)->(q,h*d) relayout.
    proj = jnp.einsum('hqd,hdD->hqD', ctx.astype(cdt), wo_ref[...],
                      preferred_element_type=jnp.float32)
    x1 = xq + jnp.sum(proj, axis=0) + bo_ref[...]        # residual (dropout=0 -> identity)

    # ---- PreNorm + FeedForward + residual ----
    h2 = _layernorm(x1, ln2g_ref[...], ln2b_ref[...]).astype(cdt)
    f1 = jnp.dot(h2, w1_ref[...], preferred_element_type=jnp.float32) + b1_ref[...]
    g = 0.5 * f1 * (1.0 + jax.lax.erf(f1 * 0.7071067811865476))      # exact GELU
    f2 = jnp.dot(g.astype(cdt), w2_ref[...], preferred_element_type=jnp.float32) + b2_ref[...]
    o_ref[0] = x1 + f2


def _pick_block_q(n):
    # Larger seq tiles amortize per-step overhead; fall back to the full sequence
    # when it is short / not tileable.
    for cand in (512, 256, 128):
        if n % cand == 0:
            return cand
    return n


def transformer_layer(x, params, *, heads, dim_head, block_q=None):
    b, n, dim = x.shape
    inner = heads * dim_head
    mlp_dim = params["w1"].shape[1]
    if block_q is None:
        block_q = _pick_block_q(n)
    assert n % block_q == 0
    num_q = n // block_q

    def full(shape):
        return pl.BlockSpec(shape, lambda bi, qi: (0,) * len(shape))

    in_specs = [
        pl.BlockSpec((1, block_q, dim), lambda bi, qi: (bi, qi, 0)),   # x  (query tile)
        pl.BlockSpec((1, n, dim), lambda bi, qi: (bi, 0, 0)),          # x  (full row, K/V)
        full((1, dim)), full((1, dim)),                                # ln1 gamma/beta
        full((3, dim, inner)),                                         # Wqkv
        full((heads, dim_head, dim)),                                  # Wo (per head)
        full((1, dim)),                                                # bo
        full((1, dim)), full((1, dim)),                                # ln2 gamma/beta
        full((dim, mlp_dim)), full((1, mlp_dim)),                      # W1, b1
        full((mlp_dim, dim)), full((1, dim)),                          # W2, b2
    ]
    out_spec = pl.BlockSpec((1, block_q, dim), lambda bi, qi: (bi, qi, 0))

    # TODO(synk): for production dims on v7x (64 MiB VMEM), K-tile the QKV/FFN matmuls
    # (reduction grid axis + f32 VMEM accumulator) or single-buffer the weight specs and
    # set vmem_limit_bytes; not needed at these sizes.
    return pl.pallas_call(
        transformer_layer_kernel,
        out_shape=jax.ShapeDtypeStruct((b, n, dim), jnp.float32),
        grid_spec=pltpu.PrefetchScalarGridSpec(
            num_scalar_prefetch=0,
            grid=(b, num_q),
            in_specs=in_specs,
            out_specs=out_spec,
        ),
        compiler_params=pltpu.CompilerParams(
            dimension_semantics=("parallel", "arbitrary")),
    )(x, x, params["ln1_g"], params["ln1_b"], params["wqkv"], params["wo"],
      params["bo"], params["ln2_g"], params["ln2_b"], params["w1"], params["b1"],
      params["w2"], params["b2"])


def init_layer_params(key, dim, heads, dim_head, mlp_dim, param_dtype=jnp.bfloat16):
    # Matmul weights in bf16 (f32 accumulation in-kernel); LN params and biases in f32.
    inner = heads * dim_head
    ks = jax.random.split(key, 6)
    s = 0.02
    rnd = lambda k, shape: s * jax.random.normal(k, shape, jnp.float32)
    return {
        "ln1_g": jnp.ones((1, dim), jnp.float32),
        "ln1_b": jnp.zeros((1, dim), jnp.float32),
        "wqkv": rnd(ks[0], (3, dim, inner)).astype(param_dtype),
        "wo": rnd(ks[1], (inner, dim)).reshape(heads, dim_head, dim).astype(param_dtype),
        "bo": rnd(ks[2], (1, dim)),
        "ln2_g": jnp.ones((1, dim), jnp.float32),
        "ln2_b": jnp.zeros((1, dim), jnp.float32),
        "w1": rnd(ks[3], (dim, mlp_dim)).astype(param_dtype),
        "b1": rnd(ks[4], (1, mlp_dim)),
        "w2": rnd(ks[5], (mlp_dim, dim)).astype(param_dtype),
        "b2": jnp.zeros((1, dim), jnp.float32),
    }


def transformer_forward(x, layer_params, *, heads, dim_head, block_q=None):
    # Depth loop: sequential data dependency, handled in plain JAX.
    # TODO(synk): overlap layer l+1 weight DMA with layer l compute via a
    # cross-pallas_call semaphore/VMEM future for memory-bound configs.
    for params in layer_params:
        x = transformer_layer(x, params, heads=heads, dim_head=dim_head,
                              block_q=block_q)
    return x


if __name__ == "__main__":
    # Small config: dim=32, depth=2, heads=2, dim_head=16, mlp_dim=64, dropout=0.0
    batch, seq, dim = 2, 8, 32
    depth, heads, dim_head, mlp_dim = 2, 2, 16, 64

    key = jax.random.PRNGKey(0)
    kx, *klayers = jax.random.split(key, depth + 1)
    x = jax.random.normal(kx, (batch, seq, dim), jnp.float32)
    layer_params = [init_layer_params(k, dim, heads, dim_head, mlp_dim)
                    for k in klayers]

    out = transformer_forward(x, layer_params, heads=heads, dim_head=dim_head)
    jax.block_until_ready(out)
    assert out.shape == (batch, seq, dim)
    print("KERNEL_OK")
</pallas_src>

<mosaic_0001>
module attributes {stable_mosaic.version = 11 : i64} {
  func.func @transformer_layer_kernel(%arg0: i32, %arg1: i32, %arg2: memref<1x8x32xf32, #tpu.memory_space<vmem>>, %arg3: memref<1x8x32xf32, #tpu.memory_space<vmem>>, %arg4: memref<1x32xf32, #tpu.memory_space<vmem>>, %arg5: memref<1x32xf32, #tpu.memory_space<vmem>>, %arg6: memref<3x32x32xbf16, #tpu.memory_space<vmem>>, %arg7: memref<2x16x32xbf16, #tpu.memory_space<vmem>>, %arg8: memref<1x32xf32, #tpu.memory_space<vmem>>, %arg9: memref<1x32xf32, #tpu.memory_space<vmem>>, %arg10: memref<1x32xf32, #tpu.memory_space<vmem>>, %arg11: memref<32x64xbf16, #tpu.memory_space<vmem>>, %arg12: memref<1x64xf32, #tpu.memory_space<vmem>>, %arg13: memref<64x32xbf16, #tpu.memory_space<vmem>>, %arg14: memref<1x32xf32, #tpu.memory_space<vmem>>, %arg15: memref<1x8x32xf32, #tpu.memory_space<vmem>>) attributes {dimension_semantics = [#tpu.dimension_semantics<parallel>, #tpu.dimension_semantics<arbitrary>], iteration_bounds = array<i64: 2, 1>, scalar_prefetch = 0 : i64, scratch_operands = 0 : i64, tpu.core_type = #tpu.core_type<tc>, window_params = [{transform_indices = @transform_0, window_bounds = array<i64: 1, 8, 32>}, {transform_indices = @transform_1, window_bounds = array<i64: 1, 8, 32>}, {pipeline_mode = #tpu.pipeline_mode<synchronous>, transform_indices = @transform_2, window_bounds = array<i64: 1, 32>}, {pipeline_mode = #tpu.pipeline_mode<synchronous>, transform_indices = @transform_3, window_bounds = array<i64: 1, 32>}, {pipeline_mode = #tpu.pipeline_mode<synchronous>, transform_indices = @transform_4, window_bounds = array<i64: 3, 32, 32>}, {pipeline_mode = #tpu.pipeline_mode<synchronous>, transform_indices = @transform_5, window_bounds = array<i64: 2, 16, 32>}, {pipeline_mode = #tpu.pipeline_mode<synchronous>, transform_indices = @transform_6, window_bounds = array<i64: 1, 32>}, {pipeline_mode = #tpu.pipeline_mode<synchronous>, transform_indices = @transform_7, window_bounds = array<i64: 1, 32>}, {pipeline_mode = #tpu.pipeline_mode<synchronous>, transform_indices = @transform_8, window_bounds = array<i64: 1, 32>}, {pipeline_mode = #tpu.pipeline_mode<synchronous>, transform_indices = @transform_9, window_bounds = array<i64: 32, 64>}, {pipeline_mode = #tpu.pipeline_mode<synchronous>, transform_indices = @transform_10, window_bounds = array<i64: 1, 64>}, {pipeline_mode = #tpu.pipeline_mode<synchronous>, transform_indices = @transform_11, window_bounds = array<i64: 64, 32>}, {pipeline_mode = #tpu.pipeline_mode<synchronous>, transform_indices = @transform_12, window_bounds = array<i64: 1, 32>}, {transform_indices = @transform_13, window_bounds = array<i64: 1, 8, 32>}]} {
    %c0 = arith.constant 0 : index
    %c0_0 = arith.constant 0 : index
    %c0_1 = arith.constant 0 : index
    %0 = vector.load %arg2[%c0, %c0_0, %c0_1] : memref<1x8x32xf32, #tpu.memory_space<vmem>>, vector<1x8x32xf32>
    %1 = vector.shape_cast %0 : vector<1x8x32xf32> to vector<8x32xf32>
    %c0_2 = arith.constant 0 : index
    %c0_3 = arith.constant 0 : index
    %c0_4 = arith.constant 0 : index
    %2 = vector.load %arg3[%c0_2, %c0_3, %c0_4] : memref<1x8x32xf32, #tpu.memory_space<vmem>>, vector<1x8x32xf32>
    %3 = vector.shape_cast %2 : vector<1x8x32xf32> to vector<8x32xf32>
    %c0_5 = arith.constant 0 : index
    %c0_6 = arith.constant 0 : index
    %4 = vector.load %arg4[%c0_5, %c0_6] : memref<1x32xf32, #tpu.memory_space<vmem>>, vector<1x32xf32>
    %c0_7 = arith.constant 0 : index
    %c0_8 = arith.constant 0 : index
    %5 = vector.load %arg5[%c0_7, %c0_8] : memref<1x32xf32, #tpu.memory_space<vmem>>, vector<1x32xf32>
    %cst = arith.constant dense<0.000000e+00> : vector<8xf32>
    %6 = vector.multi_reduction <add>, %1, %cst [1] : vector<8x32xf32> to vector<8xf32>
    %7 = vector.shape_cast %6 : vector<8xf32> to vector<8x1xf32>
    %cst_9 = arith.constant 3.200000e+01 : f32
    %8 = vector.broadcast %cst_9 : f32 to vector<8x1xf32>
    %9 = arith.divf %7, %8 : vector<8x1xf32>
    %10 = vector.broadcast %9 : vector<8x1xf32> to vector<8x32xf32>
    %11 = arith.subf %1, %10 : vector<8x32xf32>
    %12 = arith.mulf %11, %11 : vector<8x32xf32>
    %cst_10 = arith.constant dense<0.000000e+00> : vector<8xf32>
    %13 = vector.multi_reduction <add>, %12, %cst_10 [1] : vector<8x32xf32> to vector<8xf32>
    %14 = vector.shape_cast %13 : vector<8xf32> to vector<8x1xf32>
    %cst_11 = arith.constant 3.200000e+01 : f32
    %15 = vector.broadcast %cst_11 : f32 to vector<8x1xf32>
    %16 = arith.divf %14, %15 : vector<8x1xf32>
    %17 = vector.broadcast %9 : vector<8x1xf32> to vector<8x32xf32>
    %18 = arith.subf %1, %17 : vector<8x32xf32>
    %cst_12 = arith.constant 9.99999974E-6 : f32
    %19 = vector.broadcast %cst_12 : f32 to vector<8x1xf32>
    %20 = arith.addf %16, %19 : vector<8x1xf32>
    %21 = math.rsqrt %20 : vector<8x1xf32>
    %22 = vector.broadcast %21 : vector<8x1xf32> to vector<8x32xf32>
    %23 = arith.mulf %18, %22 : vector<8x32xf32>
    %24 = vector.broadcast %4 : vector<1x32xf32> to vector<8x32xf32>
    %25 = arith.mulf %23, %24 : vector<8x32xf32>
    %26 = vector.broadcast %5 : vector<1x32xf32> to vector<8x32xf32>
    %27 = arith.addf %25, %26 : vector<8x32xf32>
    %28 = arith.truncf %27 : vector<8x32xf32> to vector<8x32xbf16>
    %c0_13 = arith.constant 0 : index
    %c0_14 = arith.constant 0 : index
    %29 = vector.load %arg4[%c0_13, %c0_14] : memref<1x32xf32, #tpu.memory_space<vmem>>, vector<1x32xf32>
    %c0_15 = arith.constant 0 : index
    %c0_16 = arith.constant 0 : index
    %30 = vector.load %arg5[%c0_15, %c0_16] : memref<1x32xf32, #tpu.memory_space<vmem>>, vector<1x32xf32>
    %cst_17 = arith.constant dense<0.000000e+00> : vector<8xf32>
    %31 = vector.multi_reduction <add>, %3, %cst_17 [1] : vector<8x32xf32> to vector<8xf32>
    %32 = vector.shape_cast %31 : vector<8xf32> to vector<8x1xf32>
    %cst_18 = arith.constant 3.200000e+01 : f32
    %33 = vector.broadcast %cst_18 : f32 to vector<8x1xf32>
    %34 = arith.divf %32, %33 : vector<8x1xf32>
    %35 = vector.broadcast %34 : vector<8x1xf32> to vector<8x32xf32>
    %36 = arith.subf %3, %35 : vector<8x32xf32>
    %37 = arith.mulf %36, %36 : vector<8x32xf32>
    %cst_19 = arith.constant dense<0.000000e+00> : vector<8xf32>
    %38 = vector.multi_reduction <add>, %37, %cst_19 [1] : vector<8x32xf32> to vector<8xf32>
    %39 = vector.shape_cast %38 : vector<8xf32> to vector<8x1xf32>
    %cst_20 = arith.constant 3.200000e+01 : f32
    %40 = vector.broadcast %cst_20 : f32 to vector<8x1xf32>
    %41 = arith.divf %39, %40 : vector<8x1xf32>
    %42 = vector.broadcast %34 : vector<8x1xf32> to vector<8x32xf32>
    %43 = arith.subf %3, %42 : vector<8x32xf32>
    %cst_21 = arith.constant 9.99999974E-6 : f32
    %44 = vector.broadcast %cst_21 : f32 to vector<8x1xf32>
    %45 = arith.addf %41, %44 : vector<8x1xf32>
    %46 = math.rsqrt %45 : vector<8x1xf32>
    %47 = vector.broadcast %46 : vector<8x1xf32> to vector<8x32xf32>
    %48 = arith.mulf %43, %47 : vector<8x32xf32>
    %49 = vector.broadcast %29 : vector<1x32xf32> to vector<8x32xf32>
    %50 = arith.mulf %48, %49 : vector<8x32xf32>
    %51 = vector.broadcast %30 : vector<1x32xf32> to vector<8x32xf32>
    %52 = arith.addf %50, %51 : vector<8x32xf32>
    %53 = arith.truncf %52 : vector<8x32xf32> to vector<8x32xbf16>
    %c0_22 = arith.constant 0 : index
    %c0_23 = arith.constant 0 : index
    %c0_24 = arith.constant 0 : index
    %54 = vector.load %arg6[%c0_22, %c0_23, %c0_24] : memref<3x32x32xbf16, #tpu.memory_space<vmem>>, vector<1x32x32xbf16>
    %55 = vector.shape_cast %54 : vector<1x32x32xbf16> to vector<32x32xbf16>
    %cst_25 = arith.constant dense<0.000000e+00> : vector<8x32xf32>
    %56 = tpu.matmul %28, %55, %cst_25 {dimension_numbers = #tpu.dot_dimension_numbers<[1], [0], [0], [1], [0, 0, 1, 1], [], []>} : vector<8x32xbf16>, vector<32x32xbf16>, vector<8x32xf32> -> vector<8x32xf32>
    %cst_26 = arith.constant 2.500000e-01 : f32
    %57 = vector.broadcast %cst_26 : f32 to vector<8x32xf32>
    %58 = arith.mulf %56, %57 : vector<8x32xf32>
    %c1 = arith.constant 1 : index
    %c0_27 = arith.constant 0 : index
    %c0_28 = arith.constant 0 : index
    %59 = vector.load %arg6[%c1, %c0_27, %c0_28] : memref<3x32x32xbf16, #tpu.memory_space<vmem>>, vector<1x32x32xbf16>
    %60 = vector.shape_cast %59 : vector<1x32x32xbf16> to vector<32x32xbf16>
    %cst_29 = arith.constant dense<0.000000e+00> : vector<8x32xf32>
    %61 = tpu.matmul %53, %60, %cst_29 {dimension_numbers = #tpu.dot_dimension_numbers<[1], [0], [0], [1], [0, 0, 1, 1], [], []>} : vector<8x32xbf16>, vector<32x32xbf16>, vector<8x32xf32> -> vector<8x32xf32>
    %c2 = arith.constant 2 : index
    %c0_30 = arith.constant 0 : index
    %c0_31 = arith.constant 0 : index
    %62 = vector.load %arg6[%c2, %c0_30, %c0_31] : memref<3x32x32xbf16, #tpu.memory_space<vmem>>, vector<1x32x32xbf16>
    %63 = vector.shape_cast %62 : vector<1x32x32xbf16> to vector<32x32xbf16>
    %cst_32 = arith.constant dense<0.000000e+00> : vector<8x32xf32>
    %64 = tpu.matmul %53, %63, %cst_32 {dimension_numbers = #tpu.dot_dimension_numbers<[1], [0], [0], [1], [0, 0, 1, 1], [], []>} : vector<8x32xbf16>, vector<32x32xbf16>, vector<8x32xf32> -> vector<8x32xf32>
    %65 = vector.shape_cast %58 : vector<8x32xf32> to vector<8x2x16xf32>
    %66 = tpu.transpose %65, [1, 0, 2] : vector<8x2x16xf32> -> vector<2x8x16xf32>
    %67 = arith.truncf %66 : vector<2x8x16xf32> to vector<2x8x16xbf16>
    %68 = vector.shape_cast %61 : vector<8x32xf32> to vector<8x2x16xf32>
    %69 = tpu.transpose %68, [1, 0, 2] : vector<8x2x16xf32> -> vector<2x8x16xf32>
    %70 = arith.truncf %69 : vector<2x8x16xf32> to vector<2x8x16xbf16>
    %71 = vector.shape_cast %64 : vector<8x32xf32> to vector<8x2x16xf32>
    %72 = tpu.transpose %71, [1, 0, 2] : vector<8x2x16xf32> -> vector<2x8x16xf32>
    %73 = arith.truncf %72 : vector<2x8x16xf32> to vector<2x8x16xbf16>
    "tpu.trace_start"() <{level = 10 : i32, message = "hqd,hkd->hqk"}> : () -> ()
    %cst_33 = arith.constant dense<0.000000e+00> : vector<2x8x8xf32>
    %74 = tpu.matmul %67, %70, %cst_33 {dimension_numbers = #tpu.dot_dimension_numbers<[2], [2], [1], [1], [0, 0, 0, 1, 1, 1], [0], [0]>} : vector<2x8x16xbf16>, vector<2x8x16xbf16>, vector<2x8x8xf32> -> vector<2x8x8xf32>
    "tpu.trace_stop"() : () -> ()
    %cst_34 = arith.constant dense<0xFF800000> : vector<2x8xf32>
    %75 = vector.multi_reduction <maximumf>, %74, %cst_34 [2] : vector<2x8x8xf32> to vector<2x8xf32>
    %76 = vector.shape_cast %75 : vector<2x8xf32> to vector<2x8x1xf32>
    %77 = vector.broadcast %76 : vector<2x8x1xf32> to vector<2x8x8xf32>
    %78 = arith.subf %74, %77 : vector<2x8x8xf32>
    %79 = math.exp %78 : vector<2x8x8xf32>
    %cst_35 = arith.constant dense<0.000000e+00> : vector<2x8xf32>
    %80 = vector.multi_reduction <add>, %79, %cst_35 [2] : vector<2x8x8xf32> to vector<2x8xf32>
    %81 = vector.shape_cast %80 : vector<2x8xf32> to vector<2x8x1xf32>
    %82 = tpu.reciprocal %81 {approx = true} : vector<2x8x1xf32> -> vector<2x8x1xf32>
    %83 = vector.broadcast %82 : vector<2x8x1xf32> to vector<2x8x8xf32>
    %84 = arith.mulf %79, %83 : vector<2x8x8xf32>
    %85 = arith.truncf %84 : vector<2x8x8xf32> to vector<2x8x8xbf16>
    "tpu.trace_start"() <{level = 10 : i32, message = "hqk,hkd->hqd"}> : () -> ()
    %cst_36 = arith.constant dense<0.000000e+00> : vector<2x8x16xf32>
    %86 = tpu.matmul %85, %73, %cst_36 {dimension_numbers = #tpu.dot_dimension_numbers<[2], [1], [1], [2], [0, 0, 0, 1, 1, 2], [0], [0]>} : vector<2x8x8xbf16>, vector<2x8x16xbf16>, vector<2x8x16xf32> -> vector<2x8x16xf32>
    "tpu.trace_stop"() : () -> ()
    %87 = arith.truncf %86 : vector<2x8x16xf32> to vector<2x8x16xbf16>
    %c0_37 = arith.constant 0 : index
    %c0_38 = arith.constant 0 : index
    %c0_39 = arith.constant 0 : index
    %88 = vector.load %arg7[%c0_37, %c0_38, %c0_39] : memref<2x16x32xbf16, #tpu.memory_space<vmem>>, vector<2x16x32xbf16>
    "tpu.trace_start"() <{level = 10 : i32, message = "hqd,hdD->hqD"}> : () -> ()
    %cst_40 = arith.constant dense<0.000000e+00> : vector<2x8x32xf32>
    %89 = tpu.matmul %87, %88, %cst_40 {dimension_numbers = #tpu.dot_dimension_numbers<[2], [1], [1], [2], [0, 0, 0, 1, 1, 2], [0], [0]>} : vector<2x8x16xbf16>, vector<2x16x32xbf16>, vector<2x8x32xf32> -> vector<2x8x32xf32>
    "tpu.trace_stop"() : () -> ()
    %cst_41 = arith.constant dense<0.000000e+00> : vector<8x32xf32>
    %90 = vector.multi_reduction <add>, %89, %cst_41 [0] : vector<2x8x32xf32> to vector<8x32xf32>
    %91 = arith.addf %1, %90 : vector<8x32xf32>
    %c0_42 = arith.constant 0 : index
    %c0_43 = arith.constant 0 : index
    %92 = vector.load %arg8[%c0_42, %c0_43] : memref<1x32xf32, #tpu.memory_space<vmem>>, vector<1x32xf32>
    %93 = vector.broadcast %92 : vector<1x32xf32> to vector<8x32xf32>
    %94 = arith.addf %91, %93 : vector<8x32xf32>
    %c0_44 = arith.constant 0 : index
    %c0_45 = arith.constant 0 : index
    %95 = vector.load %arg9[%c0_44, %c0_45] : memref<1x32xf32, #tpu.memory_space<vmem>>, vector<1x32xf32>
    %c0_46 = arith.constant 0 : index
    %c0_47 = arith.constant 0 : index
    %96 = vector.load %arg10[%c0_46, %c0_47] : memref<1x32xf32, #tpu.memory_space<vmem>>, vector<1x32xf32>
    %cst_48 = arith.constant dense<0.000000e+00> : vector<8xf32>
    %97 = vector.multi_reduction <add>, %94, %cst_48 [1] : vector<8x32xf32> to vector<8xf32>
    %98 = vector.shape_cast %97 : vector<8xf32> to vector<8x1xf32>
    %cst_49 = arith.constant 3.200000e+01 : f32
    %99 = vector.broadcast %cst_49 : f32 to vector<8x1xf32>
    %100 = arith.divf %98, %99 : vector<8x1xf32>
    %101 = vector.broadcast %100 : vector<8x1xf32> to vector<8x32xf32>
    %102 = arith.subf %94, %101 : vector<8x32xf32>
    %103 = arith.mulf %102, %102 : vector<8x32xf32>
    %cst_50 = arith.constant dense<0.000000e+00> : vector<8xf32>
    %104 = vector.multi_reduction <add>, %103, %cst_50 [1] : vector<8x32xf32> to vector<8xf32>
    %105 = vector.shape_cast %104 : vector<8xf32> to vector<8x1xf32>
    %cst_51 = arith.constant 3.200000e+01 : f32
    %106 = vector.broadcast %cst_51 : f32 to vector<8x1xf32>
    %107 = arith.divf %105, %106 : vector<8x1xf32>
    %108 = vector.broadcast %100 : vector<8x1xf32> to vector<8x32xf32>
    %109 = arith.subf %94, %108 : vector<8x32xf32>
    %cst_52 = arith.constant 9.99999974E-6 : f32
    %110 = vector.broadcast %cst_52 : f32 to vector<8x1xf32>
    %111 = arith.addf %107, %110 : vector<8x1xf32>
    %112 = math.rsqrt %111 : vector<8x1xf32>
    %113 = vector.broadcast %112 : vector<8x1xf32> to vector<8x32xf32>
    %114 = arith.mulf %109, %113 : vector<8x32xf32>
    %115 = vector.broadcast %95 : vector<1x32xf32> to vector<8x32xf32>
    %116 = arith.mulf %114, %115 : vector<8x32xf32>
    %117 = vector.broadcast %96 : vector<1x32xf32> to vector<8x32xf32>
    %118 = arith.addf %116, %117 : vector<8x32xf32>
    %119 = arith.truncf %118 : vector<8x32xf32> to vector<8x32xbf16>
    %c0_53 = arith.constant 0 : index
    %c0_54 = arith.constant 0 : index
    %120 = vector.load %arg11[%c0_53, %c0_54] : memref<32x64xbf16, #tpu.memory_space<vmem>>, vector<32x64xbf16>
    %cst_55 = arith.constant dense<0.000000e+00> : vector<8x64xf32>
    %121 = tpu.matmul %119, %120, %cst_55 {dimension_numbers = #tpu.dot_dimension_numbers<[1], [0], [0], [1], [0, 0, 1, 1], [], []>} : vector<8x32xbf16>, vector<32x64xbf16>, vector<8x64xf32> -> vector<8x64xf32>
    %c0_56 = arith.constant 0 : index
    %c0_57 = arith.constant 0 : index
    %122 = vector.load %arg12[%c0_56, %c0_57] : memref<1x64xf32, #tpu.memory_space<vmem>>, vector<1x64xf32>
    %123 = vector.broadcast %122 : vector<1x64xf32> to vector<8x64xf32>
    %124 = arith.addf %121, %123 : vector<8x64xf32>
    %cst_58 = arith.constant 5.000000e-01 : f32
    %125 = vector.broadcast %cst_58 : f32 to vector<8x64xf32>
    %126 = arith.mulf %125, %124 : vector<8x64xf32>
    %cst_59 = arith.constant 0.707106769 : f32
    %127 = vector.broadcast %cst_59 : f32 to vector<8x64xf32>
    %128 = arith.mulf %124, %127 : vector<8x64xf32>
    %129 = math.erf %128 : vector<8x64xf32>
    %cst_60 = arith.constant 1.000000e+00 : f32
    %130 = vector.broadcast %cst_60 : f32 to vector<8x64xf32>
    %131 = arith.addf %130, %129 : vector<8x64xf32>
    %132 = arith.mulf %126, %131 : vector<8x64xf32>
    %133 = arith.truncf %132 : vector<8x64xf32> to vector<8x64xbf16>
    %c0_61 = arith.constant 0 : index
    %c0_62 = arith.constant 0 : index
    %134 = vector.load %arg13[%c0_61, %c0_62] : memref<64x32xbf16, #tpu.memory_space<vmem>>, vector<64x32xbf16>
    %cst_63 = arith.constant dense<0.000000e+00> : vector<8x32xf32>
    %135 = tpu.matmul %133, %134, %cst_63 {dimension_numbers = #tpu.dot_dimension_numbers<[1], [0], [0], [1], [0, 0, 1, 1], [], []>} : vector<8x64xbf16>, vector<64x32xbf16>, vector<8x32xf32> -> vector<8x32xf32>
    %c0_64 = arith.constant 0 : index
    %c0_65 = arith.constant 0 : index
    %136 = vector.load %arg14[%c0_64, %c0_65] : memref<1x32xf32, #tpu.memory_space<vmem>>, vector<1x32xf32>
    %137 = vector.broadcast %136 : vector<1x32xf32> to vector<8x32xf32>
    %138 = arith.addf %135, %137 : vector<8x32xf32>
    %139 = arith.addf %94, %138 : vector<8x32xf32>
    %c0_66 = arith.constant 0 : index
    %c0_67 = arith.constant 0 : index
    %c0_68 = arith.constant 0 : index
    %140 = vector.load %arg15[%c0_66, %c0_67, %c0_68] : memref<1x8x32xf32, #tpu.memory_space<vmem>>, vector<1x8x32xf32>
    %141 = vector.shape_cast %140 : vector<1x8x32xf32> to vector<8x32xf32>
    %142 = vector.shape_cast %139 : vector<8x32xf32> to vector<1x8x32xf32>
    tpu.vector_store %arg15[%c0_66, %c0_67, %c0_68], %142 {strides = array<i32>} : memref<1x8x32xf32, #tpu.memory_space<vmem>>, vector<1x8x32xf32>,
    return
  }
  func.func @transform_0(%arg0: i32, %arg1: i32) -> (i32, i32, i32) {
    %c0_i32 = arith.constant 0 : i32
    %c0_i32_0 = arith.constant 0 : i32
    return %arg0, %arg1, %c0_i32 : i32, i32, i32
  }
  func.func @transform_1(%arg0: i32, %arg1: i32) -> (i32, i32, i32) {
    %c0_i32 = arith.constant 0 : i32
    %c0_i32_0 = arith.constant 0 : i32
    %c0_i32_1 = arith.constant 0 : i32
    return %arg0, %c0_i32, %c0_i32_0 : i32, i32, i32
  }
  func.func @transform_2(%arg0: i32, %arg1: i32) -> (i32, i32) {
    %c0_i32 = arith.constant 0 : i32
    %c0_i32_0 = arith.constant 0 : i32
    %c0_i32_1 = arith.constant 0 : i32
    return %c0_i32, %c0_i32_0 : i32, i32
  }
  func.func @transform_3(%arg0: i32, %arg1: i32) -> (i32, i32) {
    %c0_i32 = arith.constant 0 : i32
    %c0_i32_0 = arith.constant 0 : i32
    %c0_i32_1 = arith.constant 0 : i32
    return %c0_i32, %c0_i32_0 : i32, i32
  }
  func.func @transform_4(%arg0: i32, %arg1: i32) -> (i32, i32, i32) {
    %c0_i32 = arith.constant 0 : i32
    %c0_i32_0 = arith.constant 0 : i32
    %c0_i32_1 = arith.constant 0 : i32
    %c0_i32_2 = arith.constant 0 : i32
    return %c0_i32, %c0_i32_0, %c0_i32_1 : i32, i32, i32
  }
  func.func @transform_5(%arg0: i32, %arg1: i32) -> (i32, i32, i32) {
    %c0_i32 = arith.constant 0 : i32
    %c0_i32_0 = arith.constant 0 : i32
    %c0_i32_1 = arith.constant 0 : i32
    %c0_i32_2 = arith.constant 0 : i32
    return %c0_i32, %c0_i32_0, %c0_i32_1 : i32, i32, i32
  }
  func.func @transform_6(%arg0: i32, %arg1: i32) -> (i32, i32) {
    %c0_i32 = arith.constant 0 : i32
    %c0_i32_0 = arith.constant 0 : i32
    %c0_i32_1 = arith.constant 0 : i32
    return %c0_i32, %c0_i32_0 : i32, i32
  }
  func.func @transform_7(%arg0: i32, %arg1: i32) -> (i32, i32) {
    %c0_i32 = arith.constant 0 : i32
    %c0_i32_0 = arith.constant 0 : i32
    %c0_i32_1 = arith.constant 0 : i32
    return %c0_i32, %c0_i32_0 : i32, i32
  }
  func.func @transform_8(%arg0: i32, %arg1: i32) -> (i32, i32) {
    %c0_i32 = arith.constant 0 : i32
    %c0_i32_0 = arith.constant 0 : i32
    %c0_i32_1 = arith.constant 0 : i32
    return %c0_i32, %c0_i32_0 : i32, i32
  }
  func.func @transform_9(%arg0: i32, %arg1: i32) -> (i32, i32) {
    %c0_i32 = arith.constant 0 : i32
    %c0_i32_0 = arith.constant 0 : i32
    %c0_i32_1 = arith.constant 0 : i32
    return %c0_i32, %c0_i32_0 : i32, i32
  }
  func.func @transform_10(%arg0: i32, %arg1: i32) -> (i32, i32) {
    %c0_i32 = arith.constant 0 : i32
    %c0_i32_0 = arith.constant 0 : i32
    %c0_i32_1 = arith.constant 0 : i32
    return %c0_i32, %c0_i32_0 : i32, i32
  }
  func.func @transform_11(%arg0: i32, %arg1: i32) -> (i32, i32) {
    %c0_i32 = arith.constant 0 : i32
    %c0_i32_0 = arith.constant 0 : i32
    %c0_i32_1 = arith.constant 0 : i32
    return %c0_i32, %c0_i32_0 : i32, i32
  }
  func.func @transform_12(%arg0: i32, %arg1: i32) -> (i32, i32) {
    %c0_i32 = arith.constant 0 : i32
    %c0_i32_0 = arith.constant 0 : i32
    %c0_i32_1 = arith.constant 0 : i32
    return %c0_i32, %c0_i32_0 : i32, i32
  }
  func.func @transform_13(%arg0: i32, %arg1: i32) -> (i32, i32, i32) {
    %c0_i32 = arith.constant 0 : i32
    %c0_i32_0 = arith.constant 0 : i32
    return %arg0, %arg1, %c0_i32 : i32, i32, i32
  }
}

</mosaic_0001>

<bundles_post_ra>
// kernel: tpu_custom_call.1
= control target key start
LH: loop header
LB: loop body
LE: loop exit
PB: predicated region body
PF: predicated region fallthrough
CT: control target
= control target key end

     0   :  { %s3049_s0 = inlined_call_operand.hbm [shape: f32[2,8,32], index: 0, kind: input, shape index: {}]   ;;  %s3050_s1 = inlined_call_operand.hbm [shape: f32[2,8,32], index: 1, kind: input, shape index: {}]   ;;  %s3051_s2 = inlined_call_operand.hbm [shape: f32[1,32], index: 2, kind: input, shape index: {}]   ;;  %s3052_s3 = inlined_call_operand.hbm [shape: f32[1,32], index: 3, kind: input, shape index: {}]   ;;  %s3053_s4 = inlined_call_operand.vmem [shape: bf16[3,32,32], index: 4, kind: input, shape index: {}]   ;;  %s3054_s5 = inlined_call_operand.hbm [shape: bf16[2,16,32], index: 5, kind: input, shape index: {}]   ;;  %s3055_s6 = inlined_call_operand.hbm [shape: f32[1,32], index: 6, kind: input, shape index: {}]   ;;  %s3056_s7 = inlined_call_operand.hbm [shape: f32[1,32], index: 7, kind: input, shape index: {}]   ;;  %s3057_s8 = inlined_call_operand.hbm [shape: f32[1,32], index: 8, kind: input, shape index: {}]   ;;  %s3058_s9 = inlined_call_operand.vmem [shape: bf16[32,64], index: 9, kind: input, shape index: {}]   ;;  %s3059_s10 = inlined_call_operand.vmem [shape: f32[1,64], index: 10, kind: input, shape index: {}]   ;;  %s3060_s11 = inlined_call_operand.vmem [shape: bf16[64,32], index: 11, kind: input, shape index: {}]   ;;  %s3061_s12 = inlined_call_operand.vmem [shape: f32[1,32], index: 12, kind: input, shape index: {}]   ;;  %s3062_s13 = inlined_call_operand.hbm [shape: f32[2,8,32], index: 13, kind: output, shape index: {}]  }
   0x1   :  { %3068 = sst [smem:[#allocation26_spill]] %s3049_s0 }
   0x2   :  { %3069 = sst [smem:[#allocation27_spill]] %s3051_s2 }
   0x3   :  { %3070 = sst [smem:[#allocation28_spill]] %s3052_s3 }
   0x4   :  { %3071 = sst [smem:[#allocation29_spill]] %s3054_s5 }
   0x5   :  { %3072 = sst [smem:[#allocation30_spill]] %s3055_s6 }
   0x6   :  { %3073 = sst [smem:[#allocation31_spill]] %s3056_s7 }
   0x7   :  { %3074 = sst [smem:[#allocation32_spill]] %s3057_s8 }
   0x8   :  { %3075 = sst [smem:[#allocation33_spill]] %s3061_s12 }
   0x9   :  { %3076 = sst [smem:[#allocation34_spill]] %s3062_s13 }
   0xa   :  { %18 = vsyncpa [#allocation3], 0 }
   0xb   :  { %20 = vsyncpa [#allocation3 + $0x1], 0 }
   0xc   :  { %21 = vsyncpa [#allocation6], 0 }
   0xd   :  { %23 = vsyncpa [#allocation6 + $0x1], 0 }
   0xe   :  { %24 = vsyncpa [#allocation9], 0 }
   0xf   :  { %25 = vsyncpa [#allocation12], 0 }
  0x10   :  { %26 = vsyncpa [#allocation15], 0 }
  0x11   :  { %27 = vsyncpa [#allocation4], 0 }
  0x12   :  { %29 = vsyncpa [#allocation4 + $0x1], 0  ;;  %s2618_s25 = smov 0   ;;  %s2620_s26 = smov 0  }
  0x13   :  { %s2622_s27 = smov 0   ;;  %s2624_s28 = smov 0  }
  0x14   :  { %s2626_s29 = smov 0   ;;  %s2628_s30 = smov 0  }
  0x15 LB: > { %3077 = sst [smem:[#allocation24_spill]] %s2526_s29  ;;  %s2649_s14 = sadd.s32 4294967295, %s2530_s30   ;;  %s2530_s30 = sphi %s2628_s30, %s35_s30   ;;  %s2526_s29 = sphi %s2626_s29, %s3108_s29   ;;  %s2522_s28 = sphi %s2624_s28, %s3107_s28   ;;  %s2518_s27 = sphi %s2622_s27, %s3111_s27   ;;  %s2514_s26 = sphi %s2620_s26, %s3110_s26   ;;  %s2510_s25 = sphi %s2618_s25, %s3109_s25  }
  0x16   : > { %p1872_p0 = scmp.ge.s32.totalorder %s2530_s30, 1  ;;  %p3064_p1 = scmp.eq.s32.totalorder %s2649_s14, 0 }
  0x17   : > { %p365_p2 = scmp.lt.s32.totalorder %s2530_s30, 3  ;;  %s2532_s16 = smov [#allocation7]  }
  0x18   : > { %s378_s17 = sshll.u32 %s2532_s16, 4  ;;  %s2533_s18 = smov [#allocation8]   ;;  %s379_s17 = int_to_ptr.vmem [resolvable:$true] %s378_s17 }
  0x19   : > { %p2654_p3 = pnand %p1872_p0, %p365_p2  ;;  %s389_s19 = sshll.u32 %s2533_s18, 4  ;;  %s390_s19 = int_to_ptr.vmem [resolvable:$true] %s389_s19 }
  0x1a   : > { %s2534_s21 = smov [#allocation11]   ;;  %s2229_s24 = scalar_lea.vmem %s379_s17, 16 }
  0x1b   : > { %s3078_s15 = scalar_select %p2654_p3, 1, 0 }
  0x1c   : > { %p2083_p5 = pneg %p2654_p3  ;;  %s416_s22 = sshll.u32 %s2534_s21, 4  ;;  %s2667_s22 = int_to_ptr.vmem [resolvable:$true] %s416_s22 }
  0x1d   : > { %p2230_p8 = scmp.ne.s32.totalorder %s379_s17, %s2229_s24  ;;  %s2236_s16 = scalar_lea.vmem %s379_s17, 32 }
  0x1e   : > { %p2663_p6 = pnand %p2083_p5, %p3064_p1  ;;  %p2237_p11 = scmp.lt.s32.totalorder %s379_s17, %s379_s17 }
  0x1f   : > { %p2238_p12 = scmp.lt.s32.totalorder %s2236_s16, %s2229_s24 }
  0x20   : > { %p2671_p7 = pneg %p2663_p6 }
  0x21   : > { %p2239_p13 = por %p2238_p12, %p2237_p11 }
  0x22   : > { %p2232_p9 = pnand %p2230_p8, %p2671_p7 }
  0x24   : > { %p2233_p10 = pneg %p2232_p9 }
  0x26   : > { %p2240_p0 = pnand %p2239_p13, %p2233_p10 }
  0x28   : > { %2243 = shalt.err (!%p2240_p0)
}
  0x29   : > { %s3081_s2 = sld [smem:[#allocation27_spill]]  ;;  %s2255_s13 = scalar_lea.vmem %s390_s19, 16 }
  0x2a   : > { %p2256_p2 = scmp.ne.s32.totalorder %s390_s19, %s2255_s13  ;;  %s2262_s12 = scalar_lea.vmem %s390_s19, 32 }
  0x2b   : > { %p2263_p8 = scmp.lt.s32.totalorder %s390_s19, %s390_s19  ;;  %p2264_p9 = scmp.lt.s32.totalorder %s2262_s12, %s2255_s13 }
  0x2c   : > { %p2258_p5 = pnand %p2256_p2, %p2671_p7 }
  0x2d   : > { %p2265_p1 = por %p2264_p9, %p2263_p8 }
  0x2e   : > { %p2259_p4 = pneg %p2258_p5 }
  0x2f   : > { %2086 = dma.hbm_to_vmem [thread:$0]  (!%p2663_p6), %s3081_s2, 16, %s379_s17, [#allocation6]  }
  0x30   : > { %p2266_p3 = pnand %p2265_p1, %p2259_p4 }
  0x32   : > { %2269 = shalt.err (!%p2266_p3)
}
  0x33   : > { %s3082_s3 = sld [smem:[#allocation28_spill]]  ;;  %s2281_s17 = scalar_lea.vmem %s2667_s22, 16 }
  0x34   : > { %p2282_p10 = scmp.ne.s32.totalorder %s2667_s22, %s2281_s17  ;;  %s2288_s12 = scalar_lea.vmem %s2667_s22, 32 }
  0x35   : > { %p2289_p1 = scmp.lt.s32.totalorder %s2667_s22, %s2667_s22  ;;  %p2290_p3 = scmp.lt.s32.totalorder %s2288_s12, %s2281_s17 }
  0x36   : > { %p2284_p11 = pnand %p2282_p10, %p2671_p7 }
  0x37   : > { %p2291_p4 = por %p2290_p3, %p2289_p1 }
  0x38   : > { %p2285_p12 = pneg %p2284_p11 }
  0x39   : > { %2089 = dma.hbm_to_vmem [thread:$0]  (!%p2663_p6), %s3082_s3, 16, %s390_s19, [#allocation9]  }
  0x3a   : > { %p2292_p13 = pnand %p2291_p4, %p2285_p12 }
  0x3c   : > { %2295 = shalt.err (!%p2292_p13)
}
  0x3d   : > { %s3083_s6 = sld [smem:[#allocation30_spill]]  ;;  %s2535_s19 = smov [#allocation10]  }
  0x3e   : > { %s402_s21 = sshll.u32 %s2535_s19, 4  ;;  %s403_s21 = int_to_ptr.vmem [resolvable:$true] %s402_s21 }
  0x3f   : > { %s2307_s24 = scalar_lea.vmem %s403_s21, 256  ;;  %p2315_p8 = scmp.lt.s32.totalorder %s403_s21, %s403_s21 }
  0x40   : > { %p2308_p0 = scmp.ne.s32.totalorder %s403_s21, %s2307_s24  ;;  %p2316_p9 = scmp.lt.s32.totalorder %s2307_s24, %s2307_s24 }
  0x42   : > { %p2310_p2 = pnand %p2308_p0, %p2671_p7  ;;  %p2317_p10 = por %p2316_p9, %p2315_p8 }
  0x43   : > { %2095 = dma.hbm_to_vmem [thread:$0]  (!%p2663_p6), %s3083_s6, 16, %s2667_s22, [#allocation12]  }
  0x44   : > { %p2311_p5 = pneg %p2310_p2 }
  0x46   : > { %p2318_p11 = pnand %p2317_p10, %p2311_p5 }
  0x48   : > { %2321 = shalt.err (!%p2318_p11)
}
  0x49   : > { %s2536_s16 = smov 64   ;;  %s2537_s17 = smov 4  }
  0x4a   : > { %s3084_s5 = sld [smem:[#allocation29_spill]]  ;;  %s2538_s13 = smov [#allocation13]  }
  0x4b   : > { %s427_s18 = sshll.u32 %s2538_s13, 4  ;;  %s2539_s19 = smov [#allocation14]   ;;  %s428_s18 = int_to_ptr.vmem [resolvable:$true] %s427_s18 }
  0x4c   : > { %s438_s2 = sshll.u32 %s2539_s19, 4  ;;  %s2333_s3 = scalar_lea.vmem %s428_s18, 16  ;;  %s439_s2 = int_to_ptr.vmem [resolvable:$true] %s438_s2 }
  0x4d   : > { %p2334_p12 = scmp.ne.s32.totalorder %s428_s18, %s2333_s3  ;;  %s2340_s24 = scalar_lea.vmem %s428_s18, 32 }
  0x4e   : > { %p2341_p4 = scmp.lt.s32.totalorder %s428_s18, %s428_s18  ;;  %p2342_p13 = scmp.lt.s32.totalorder %s2340_s24, %s2333_s3 }
  0x4f   : > { %p2336_p1 = pnand %p2334_p12, %p2671_p7 }
  0x50   : > { %2092 = dma.hbm_to_vmem [thread:$0]  (!%p2663_p6), %s3084_s5, 256, %s403_s21, [#allocation9], %s2536_s16, %s2536_s16, %s2537_s17  }
  0x51   : > { %p2337_p3 = pneg %p2336_p1  ;;  %p2343_p0 = por %p2342_p13, %p2341_p4 }
  0x53   : > { %p2344_p2 = pnand %p2343_p0, %p2337_p3 }
  0x55   : > { %2347 = shalt.err (!%p2344_p2)
}
  0x56   : > { %s3085_s7 = sld [smem:[#allocation31_spill]]  ;;  %s2359_s17 = scalar_lea.vmem %s439_s2, 16 }
  0x57   : > { %p2360_p5 = scmp.ne.s32.totalorder %s439_s2, %s2359_s17  ;;  %s2366_s12 = scalar_lea.vmem %s439_s2, 32 }
  0x58   : > { %p2367_p10 = scmp.lt.s32.totalorder %s439_s2, %s439_s2  ;;  %p2368_p11 = scmp.lt.s32.totalorder %s2366_s12, %s2359_s17 }
  0x59   : > { %p2362_p8 = pnand %p2360_p5, %p2671_p7 }
  0x5a   : > { %p2369_p12 = por %p2368_p11, %p2367_p10 }
  0x5b   : > { %p2363_p9 = pneg %p2362_p8 }
  0x5c   : > { %2098 = dma.hbm_to_vmem [thread:$0]  (!%p2663_p6), %s3085_s7, 16, %s428_s18, [#allocation12]  }
  0x5d   : > { %p2370_p1 = pnand %p2369_p12, %p2363_p9 }
  0x5f   : > { %2373 = shalt.err (!%p2370_p1)
}
  0x60   : > { %s3086_s8 = sld [smem:[#allocation32_spill]]  ;;  %s1871_s23 = sadd.s32 4294967294, %s2530_s30  }
  0x61   : > { %s47_s13 = sadd.s32 1, %s2526_s29  ;;  %s56_s20 = sadd.s32 1, %s2518_s27 }
  0x62   : > { %p49_p7 = scmp.ge.s32.totalorder %s47_s13, 2  ;;  %p63_p3 = scmp.ne.s32.totalorder %s2518_s27, %s2514_s26 }
  0x63   : > { %p64_p4 = scmp.eq.s32.totalorder %s2530_s30, 0  ;;  %p69_p0 = scmp.ne.s32.totalorder %s2514_s26, %s2510_s25 }
  0x64   : > { %s3113_s13 = smov (%p49_p7, %s47_s13), 0  ;;  %p3089_p5 = scmp.eq.s32.totalorder %s2649_s14, 0 }
  0x65   : > { %3087 = sst [smem:[#allocation25_spill]] %s3113_s13  ;;  %p2731_p13 = por %p64_p4, %p63_p3 }
  0x66   : > { %2101 = dma.hbm_to_vmem [thread:$0]  (!%p2663_p6), %s3086_s8, 16, %s439_s2, [#allocation15]  }
  0x67   : > { %s51_s2 = ssub.s32 %s2526_s29, %s3113_s13  ;;  %p352_p6 = scmp.eq.s32.totalorder %s2649_s14, 1 }
  0x68   : > { %p54_p2 = scmp.eq.s32.totalorder %s51_s2, 0  ;;  %p2742_p8 = por %p3089_p5, %p69_p0 }
  0x69   : > { %p2746_p9 = por %p352_p6, %p63_p3  ;;  %p358_p10 = scmp.eq.s32.totalorder %s1871_s23, 1 }
  0x6a   : > { %s2751_s21 = scalar_select %p54_p2, %s2518_s27, %s56_s20  }
  0x6b   : > { %p2753_p11 = por %p358_p10, %p69_p0  ;;  %p2119_p12 = scmp.lt.s32.totalorder %s2530_s30, 2 }
  0x6c   : > { %s461_s17 = sand.u32 1, %s2518_s27   ;;  %s1881_s12 = sshll.u32 %s2526_s29, 7 }
  0x6d   : > { %s1880_s3 = sshll.u32 %s461_s17, 3  ;;  %s3093_s0 = sld [smem:[#allocation26_spill]] }
  0x6e   : > { %s465_s6 = scalar_lea.vmem [#allocation2], %s1880_s3  ;;  %p2765_p1 = pnand %p2119_p12, %p2731_p13 }
  0x6f   : > { %s473_s7 = sshll.u32 %s465_s6, 4  ;;  %s2772_s13 = scalar_lea.hbm %s3050_s1, %s1881_s12  ;;  %s474_s7 = int_to_ptr.vmem [resolvable:$true] %s473_s7 }
  0x70   : > { %s462_s29 = scalar_lea.sflag [#allocation3], %s461_s17  ;;  %p2376_p7 = pneg %p2765_p1 }
  0x71   : > { %s2387_s22 = scalar_lea.vmem %s474_s7, 128  ;;  %s2540_s6 = smov [#allocation2]  }
  0x72   : > { %p2388_p3 = scmp.ne.s32.totalorder %s474_s7, %s2387_s22  ;;  %s2392_s18 = sshll.u32 %s2540_s6, 4  ;;  %s2393_s18 = int_to_ptr.vmem [resolvable:$false] %s2392_s18 }
  0x73   : > { %s471_s5 = scalar_lea.hbm %s3093_s0, %s1881_s12  ;;  %s2394_s2 = scalar_lea.vmem %s2393_s18, 256 }
  0x74   : > { %p2390_p4 = pnand %p2388_p3, %p2376_p7  ;;  %p2395_p0 = scmp.lt.s32.totalorder %s474_s7, %s2393_s18 }
  0x75   : > { %p2396_p6 = scmp.lt.s32.totalorder %s2394_s2, %s2387_s22 }
  0x76   : > { %p2391_p13 = pneg %p2390_p4 }
  0x77   : > { %p2397_p2 = por %p2396_p6, %p2395_p0 }
  0x79   : > { %p2398_p5 = pnand %p2397_p2, %p2391_p13 }
  0x7b   : > { %2401 = shalt.err (!%p2398_p5)
}
  0x7c   : > { %2105 = dma.hbm_to_vmem [thread:$0]  (!%p2765_p1), %s471_s5, 128, %s474_s7, %s462_s29  }
  0x7d   : > { %s480_s17 = sand.u32 1, %s2530_s30   ;;  %s484_s12 = scalar_lea.vmem [#allocation5], %s1880_s3 }
  0x7e   : > { %s491_s23 = sshll.u32 %s484_s12, 4  ;;  %s481_s20 = scalar_lea.sflag [#allocation6], %s480_s17  ;;  %s492_s23 = int_to_ptr.vmem [resolvable:$true] %s491_s23 }
  0x7f   : > { %s2415_s0 = scalar_lea.vmem %s492_s23, 128  ;;  %s2541_s22 = smov [#allocation5]  }
  0x80   : > { %p2416_p10 = scmp.ne.s32.totalorder %s492_s23, %s2415_s0  ;;  %s2420_s6 = sshll.u32 %s2541_s22, 4  ;;  %s2421_s6 = int_to_ptr.vmem [resolvable:$false] %s2420_s6 }
  0x81   : > { %s2422_s18 = scalar_lea.vmem %s2421_s6, 256  ;;  %p2423_p4 = scmp.lt.s32.totalorder %s492_s23, %s2421_s6 }
  0x82   : > { %p2418_p12 = pnand %p2416_p10, %p2376_p7  ;;  %p2424_p13 = scmp.lt.s32.totalorder %s2422_s18, %s2415_s0 }
  0x84   : > { %p2419_p3 = pneg %p2418_p12  ;;  %p2425_p0 = por %p2424_p13, %p2423_p4 }
  0x86   : > { %p2426_p6 = pnand %p2425_p0, %p2419_p3 }
  0x88   : > { %2429 = shalt.err (!%p2426_p6)
}
  0x89   : > { %2108 = dma.hbm_to_vmem [thread:$0]  (!%p2765_p1), %s2772_s13, 128, %s492_s23, %s481_s20  }
  0x8a   : > { %p3095_p2 = scmp.ne.s32.totalorder %s3078_s15, 0 }
  0x8b   : > { %s2791_s5 = sand.u32 (!%p3095_p2), 1, %s2514_s26  }
  0x8c   : > { %500 = sbr.rel (%p3095_p2) target bundleno = 2467 (0x9a3), region = 72  ;;  %s2794_s7 = sshll.u32 (!%p3095_p2), %s2791_s5, 3 }
  0x8d   : > { %s503_s0 = scalar_lea.sflag (!%p3095_p2), [#allocation3], %s2791_s5  ;;  %s506_s29 = scalar_lea.vmem (!%p3095_p2), [#allocation2], %s2794_s7 }
  0x91   : > { %2481 = dma.done.wait (%p2742_p8), %s503_s0, 128  }
  0x92   : > { %2483 = vsyncadd (%p2742_p8), %s503_s0, 4294967168  ;;  %s511_s8 = sand.u32 1, %s2649_s14   ;;  %s515_s13 = scalar_lea.vmem [#allocation5], %s2794_s7 }
  0x93   : > { %s512_s15 = scalar_lea.sflag [#allocation6], %s511_s8 }
  0x94   : > { %2485 = dma.done.wait (%p2742_p8), %s512_s15, 128  }
  0x95   : > { %2487 = vsyncadd (%p2742_p8), %s512_s15, 4294967168  ;;  %p3096_p1 = scmp.eq.s32.totalorder %s2649_s14, 0 }
  0x97   : > { %2489 = dma.done.wait (%p3096_p1), [#allocation6], 16   ;;  %p3097_p7 = pmov %p3096_p1 }
  0x98   : > { %p3098_p5 = pmov %p3096_p1 }
  0x99   : > { %2491 = vsyncadd (%p3097_p7), [#allocation6], 4294967280 }
  0x9a   : > { %2493 = dma.done.wait (%p3098_p5), [#allocation9], 272   ;;  %p3099_p10 = pmov %p3096_p1 }
  0x9b   : > { %p3100_p12 = pmov %p3096_p1 }
  0x9c   : > { %2495 = vsyncadd (%p3099_p10), [#allocation9], 4294967024 }
  0x9d   : > { %2497 = dma.done.wait (%p3100_p12), [#allocation12], 32   ;;  %p3101_p3 = pmov %p3096_p1 }
  0x9e   : > { %p3102_p8 = pmov %p3096_p1 }
  0x9f   : > { %2499 = vsyncadd (%p3101_p3), [#allocation12], 4294967264 }
  0xa0   : > { %2501 = dma.done.wait (%p3102_p8), [#allocation15], 16   ;;  %p3103_p4 = pmov %p3096_p1 }
  0xa1   : > { %vm592_vm0 = vcmask 261120   ;;  %v2824_v0 = vld [vmem:[%s506_s29] sm:$0xff]  ;;  %v589_v1 = vld [vmem:[%s515_s13] sm:$0xff]  ;;  %v2542_v16 = vmov 0.0   ;;  %vm2543_vm1 = vmmov 0   ;;  %s2544_s29 = smov 112   ;;  %v823_v54 = vlaneseq }
  0xa2   : > { %2503 = vsyncadd (%p3103_p4), [#allocation15], 4294967280  ;;  %v593_v2 = vsel %vm592_vm0, %v2824_v0, 0.0  ;;  %v622_v3 = vsel %vm592_vm0, %v589_v1, 0.0  ;;  %v2188_v14 = vld [vmem:[%s3053_s4 + $0x8] sm:$0xff]   ;;  %1973 = vmatprep.subr.bf16.mxu1 %v2542_v16  ;;  %1989 = vmatprep.subr.bf16.mxu0 %v2542_v16  ;;  %v2189_v17 = vld [vmem:[%s3053_s4] sm:$0xff]  }
  0xa3   : > { %594 = vadd.xlane.f32.xlu0 %v593_v2  ;;  %v2190_v15 = vld [vmem:[%s3053_s4 + $0x28] sm:$0xff]   ;;  %1974 = vmatpush3.bf16.msra.mxu1 %v2188_v14  ;;  %v2192_v18 = vld [vmem:[%s3053_s4 + $0x20] sm:$0xff]   ;;  %v2191_v33 = vld [vmem:[%s3053_s4 + $0x18] sm:$0xff]   ;;  %v2545_v52 = vmov 1983009808   ;;  %v824_v56 = vshrl.u32 %v823_v54, 7 }
  0xa4   : > { %1990 = vmatpush3.bf16.msra.mxu0 %v2190_v15  ;;  %1975 = vmatprep.subr.bf16.mxu1 %v2542_v16  ;;  %v1894_v26 = vld [vmem:[#allocation7] ss:$0 sm:$0xff]  ;;  %v1895_v28 = vld [vmem:[#allocation8] ss:$0 sm:$0xff]  ;;  %v2193_v37 = vld [vmem:[%s3053_s4 + $0x10] sm:$0xff]   ;;  %v821_v53 = vunpack.c.l.s4 %v2545_v52  ;;  %vm1181_vm2 = vcmask 130048  }
  0xa5   : > { %1977 = vmatprep.mubr.msk.bf16.mxu1 %vm2543_vm1, %v2542_v16  ;;  %1991 = vmatprep.subr.bf16.mxu0 %v2542_v16  ;;  %v2546_v58 = vmov 1934713408   ;;  %vm1274_vm3 = vcmask 64512   ;;  %vm1302_vm4 = vcmask 1043456   ;;  %vm1649_vm5 = vcmask 523264   ;;  %s3104_s8 = sld [smem:[#allocation33_spill]] }
  0xa6   : > { %1993 = vmatprep.mubr.msk.bf16.mxu0 %vm2543_vm1, %v2542_v16  ;;  %v822_v55 = vunpack.c.0.s8 %v821_v53  ;;  %v852_v59 = vunpack.c.l.s4 %v2546_v58  ;;  %s1941_s15 = sshll.u32 %s2522_s28, 7  ;;  %s586_s13 = scalar_lea.vmem [#allocation16], %s2794_s7 }
  0xa7   : > { %623 = vadd.xlane.f32.xlu0 %v622_v3  ;;  %1976 = vmatpush3.bf16.msra.mxu1 %v2189_v17  ;;  %s1710_s14 = sshll.u32 %s586_s13, 4  ;;  %s3105_s2 = sld [smem:[#allocation34_spill]]  ;;  %s3002_s14 = int_to_ptr.vmem [resolvable:$true] %s1710_s14 }
  0xa8   : > { %1981 = vmatprep.subr.bf16.mxu1 %v2542_v16  ;;  %1992 = vmatpush3.bf16.msra.mxu0 %v2192_v18  ;;  %v2876_v61 = vsub.s32 %v822_v55, %v824_v56  ;;  %s1696_s28 = scalar_lea.sflag [#allocation4], %s2791_s5  ;;  %s2430_s7 = scalar_lea.vmem %s3002_s14, 128 }
  0xa9   : > { %2003 = vmatprep.subr.bf16.mxu0 %v2542_v16  ;;  %p2431_p13 = scmp.ne.s32.totalorder %s3002_s14, %s2430_s7  ;;  %s2547_s12 = smov [#allocation16]  }
  0xaa   : > { %s2434_s23 = sshll.u32 %s2547_s12, 4  ;;  %s2435_s23 = int_to_ptr.vmem [resolvable:$false] %s2434_s23 }
  0xab   : > { %p2432_p0 = pnand %p2431_p13, %p2746_p9  ;;  %s2436_s20 = scalar_lea.vmem %s2435_s23, 256 }
  0xac   : > { %p2437_p2 = scmp.lt.s32.totalorder %s3002_s14, %s2435_s23  ;;  %p2438_p1 = scmp.lt.s32.totalorder %s2436_s20, %s2430_s7 }
  0xad   : > { %s3000_s17 = scalar_lea.hbm %s3105_s2, %s1941_s15  ;;  %p2433_p6 = pneg %p2432_p0 }
  0xae   : > { %p2439_p7 = por %p2438_p1, %p2437_p2 }
  0xb0   : > { %p2440_p5 = pnand %p2439_p7, %p2433_p6 }
 0x12c   : > { %v595_v4 = vpop.xlane.xlu0 %594 }
 0x12d   : > { %v597_v5 = vmul.f32 0.03125, %v595_v4 }
 0x12f   : > { %v598_v6 = vsub.f32 %v2824_v0, %v597_v5 }
 0x130   : > { %v624_v7 = vpop.xlane.xlu0 %623 }
 0x131   : > { %v625_v8 = vmul.f32 0.03125, %v624_v7  ;;  %v599_v9 = vmul.f32 %v598_v6, %v598_v6 }
 0x133   : > { %v626_v10 = vsub.f32 %v589_v1, %v625_v8  ;;  %v600_v11 = vsel %vm592_vm0, %v599_v9, 0.0  ;;  %v853_v1 = vunpack.c.0.s8 %v852_v59 }
 0x134   : > { %601 = vadd.xlane.f32.xlu1 %v600_v11 }
 0x135   : > { %v627_v12 = vmul.f32 %v626_v10, %v626_v10  ;;  %v2884_v9 = vsub.s32 %v853_v1, %v824_v56 }
 0x137   : > { %v628_v13 = vsel %vm592_vm0, %v627_v12, 0.0 }
 0x138   : > { %629 = vadd.xlane.f32.xlu1 %v628_v13 }
 0x1bd   : > { %v602_v19 = vpop.xlane.xlu1 %601 }
 0x1be   : > { %v603_v20 = vmul.f32 0.03125, %v602_v19 }
 0x1c0   : > { %v604_v21 = vadd.f32 1e-05, %v603_v20 }
 0x1c1   : > { %v630_v22 = vpop.xlane.xlu1 %629 }
 0x1c2   : > { %2202 = vrsqrt.f32 %v604_v21  ;;  %v631_v23 = vmul.f32 0.03125, %v630_v22 }
 0x1c4   : > { %v632_v24 = vadd.f32 1e-05, %v631_v23 }
 0x1c6   : > { %2204 = vrsqrt.f32 %v632_v24 }
 0x1cf   : > { %v2203_v25 = vpop.eup %2202 }
 0x1d0   : > { %v606_v27 = vmul.f32 %v2203_v25, %v598_v6 }
 0x1d2   : > { %v613_v29 = vmul.f32 %v1894_v26, %v606_v27 }
 0x1d3   : > { %v2205_v30 = vpop.eup %2204 }
 0x1d4   : > { %v620_v31 = vadd.f32 %v1895_v28, %v613_v29  ;;  %v634_v32 = vmul.f32 %v2205_v30, %v626_v10 }
 0x1d6   : > { %v621_v34 = vpack.c.bf16 %v620_v31, %v620_v31  ;;  %v635_v35 = vmul.f32 %v1894_v26, %v634_v32 }
 0x1d8   : > { %1978 = vmatmul.mubr.msk.bf16.vlgmr.msra.gmra.mxu1 %vm592_vm0, %v621_v34  ;;  %v636_v36 = vadd.f32 %v1895_v28, %v635_v35 }
 0x1d9   : > { %1982 = vmatpush3.bf16.msra.mxu1 %v2191_v33  ;;  %1985 = vmatprep.mubr.msk.bf16.mxu1 %vm2543_vm1, %v2542_v16 }
 0x1da   : > { %1983 = vmatprep.subr.bf16.mxu1 %v2542_v16  ;;  %v637_v38 = vpack.c.bf16 %v636_v36, %v636_v36 }
 0x1dc   : > { %1994 = vmatmul.mubr.msk.bf16.vlgmr.msra.gmra.mxu0 %vm592_vm0, %v637_v38 }
 0x1dd   : > { %1984 = vmatpush3.bf16.msra.mxu1 %v2193_v37  ;;  %2005 = vmatprep.mubr.msk.bf16.mxu0 %vm2543_vm1, %v2542_v16 }
 0x1de   : > { %1997 = vmatprep.subr.bf16.mxu1 %v2542_v16 }
 0x1e0   : > { %1986 = vmatmul.mubr.msk.bf16.vlgmr.msra.gmra.mxu1 %vm592_vm0, %v637_v38 }
 0x1e1   : > { %1999 = vmatprep.mubr.msk.bf16.mxu1 %vm2543_vm1, %v2542_v16 }
 0x298   : > { %v691_v39 = vpop.f32.mrf.mxu1 }
 0x299   : > { %v697_v40 = vmul.f32 0.25, %v691_v39 }
 0x29a   : > { %v1979_v41 = vpop.f32.mrf.mxu1 }
 0x29b   : > { %816 = vrot.lane.b32.xlu1 %v697_v40, %s2544_s29  ;;  %v819_v57 = vcombine.high %v697_v40, %v2542_v16  ;;  %v826_v4 = vrot.slane %v697_v40, %v2876_v61 }
 0x29c   : > { %v694_v42 = vpop.f32.mrf.mxu1  ;;  %v2872_v43 = vpop.f32.mrf.mxu0 }
 0x29d   : > { %v833_v63 = vrot.slane %v819_v57, %v2876_v61 }
 0x29e   : > { %v1980_v44 = vpop.f32.mrf.mxu1  ;;  %v1995_v45 = vpop.f32.mrf.mxu0 }
 0x2a0   : > { %v752_v46 = vpop.f32.mrf.mxu1  ;;  %v812_v47 = vpop.f32.mrf.mxu0 }
 0x2a1   : > { %938 = vrot.lane.b32.xlu0 %v752_v46, %s2544_s29  ;;  %v941_v7 = vcombine.high %v752_v46, %v2542_v16  ;;  %v948_v12 = vrot.slane %v752_v46, %v2876_v61 }
 0x2a2   : > { %v1987_v48 = vpop.f32.mrf.mxu1  ;;  %v1996_v49 = vpop.f32.mrf.mxu0 }
 0x2a3   : > { %v955_v18 = vrot.slane %v941_v7, %v2876_v61 }
 0x2a4   : > { %v755_v50 = vpop.f32.mrf.mxu1 }
 0x2a6   : > { %v1988_v51 = vpop.f32.mrf.mxu1 }
 0x30d   : > { %v817_v60 = vpop.permute.xlu1 %816 }
 0x30e   : > { %v834_v62 = vcombine.high %v817_v60, %v2542_v16  ;;  %v841_v2 = vrot.slane %v817_v60, %v2876_v61 }
 0x310   : > { %v848_v3 = vrot.slane %v834_v62, %v2876_v61  ;;  %v849_v10 = vcombine.low %v826_v4, %v841_v2  ;;  %v850_v11 = vcombine.high %v826_v4, %v841_v2 }
 0x312   : > { %v865_v5 = vcombine.low %v833_v63, %v848_v3  ;;  %v866_v6 = vcombine.high %v833_v63, %v848_v3  ;;  %v857_v22 = vrot.slane %v849_v10, %v2884_v9  ;;  %v864_v23 = vrot.slane %v850_v11, %v2884_v9 }
 0x313   : > { %v939_v8 = vpop.permute.xlu0 %938 }
 0x314   : > { %v956_v13 = vcombine.high %v939_v8, %v2542_v16  ;;  %v963_v14 = vrot.slane %v939_v8, %v2876_v61  ;;  %v873_v15 = vrot.slane %v865_v5, %v2884_v9  ;;  %v880_v17 = vrot.slane %v866_v6, %v2884_v9 }
 0x315   : > { %v885_v34 = vcombine.low %v857_v22, %v864_v23  ;;  %v1913_v35 = vcombine.high %v857_v22, %v864_v23 }
 0x316   : > { %v970_v19 = vrot.slane %v956_v13, %v2876_v61  ;;  %v971_v20 = vcombine.low %v948_v12, %v963_v14  ;;  %v972_v21 = vcombine.high %v948_v12, %v963_v14  ;;  %v901_v28 = vcombine.low %v873_v15, %v880_v17 }
 0x317   : > { %v1914_v29 = vcombine.high %v873_v15, %v880_v17  ;;  %v892_v46 = vrot.slane %v885_v34, %v2876_v61  ;;  %v900_v47 = vrot.slane %v1913_v35, %v2876_v61 }
 0x318   : > { %v979_v24 = vrot.slane %v971_v20, %v2884_v9  ;;  %v986_v25 = vrot.slane %v972_v21, %v2884_v9  ;;  %v987_v26 = vcombine.low %v955_v18, %v970_v19  ;;  %v988_v27 = vcombine.high %v955_v18, %v970_v19 }
 0x319   : > { %v908_v40 = vrot.slane %v901_v28, %v2876_v61  ;;  %v916_v41 = vrot.slane %v1914_v29, %v2876_v61  ;;  %v917_v52 = vcombine.low %v892_v46, %v900_v47  ;;  %v1070_v29 = vrot.slane %v2872_v43, %v2876_v61 }
 0x31a   : > { %v995_v30 = vrot.slane %v987_v26, %v2884_v9  ;;  %v1002_v31 = vrot.slane %v988_v27, %v2884_v9  ;;  %v1007_v32 = vcombine.low %v979_v24, %v986_v25  ;;  %v1915_v33 = vcombine.high %v979_v24, %v986_v25 }
 0x31b   : > { %v925_v49 = vcombine.low %v908_v40, %v916_v41  ;;  %v924_v58 = vrot.slane %v917_v52, %v2884_v9  ;;  %v1063_v26 = vcombine.high %v2872_v43, %v2542_v16 }
 0x31c   : > { %v1014_v36 = vrot.slane %v1007_v32, %v2876_v61  ;;  %v1022_v37 = vrot.slane %v1915_v33, %v2876_v61  ;;  %v1023_v38 = vcombine.low %v995_v30, %v1002_v31  ;;  %v1916_v39 = vcombine.high %v995_v30, %v1002_v31 }
 0x31d   : > { %v932_v57 = vrot.slane %v925_v49, %v2884_v9  ;;  %v1077_v32 = vrot.slane %v1063_v26, %v2876_v61 }
 0x31e   : > { %v1030_v42 = vrot.slane %v1023_v38, %v2876_v61  ;;  %v1038_v44 = vrot.slane %v1916_v39, %v2876_v61  ;;  %v1039_v45 = vcombine.low %v1014_v36, %v1022_v37 }
 0x31f   : > { %v933_v62 = vcombine.low %v924_v58, %v932_v57  ;;  %v934_v63 = vcombine.high %v924_v58, %v932_v57 }
 0x320   : > { %v1047_v48 = vcombine.low %v1030_v42, %v1038_v44  ;;  %v1046_v50 = vrot.slane %v1039_v45, %v2884_v9 }
 0x321   : > { %v935_v1 = vpack.c.bf16 %v933_v62, %v933_v62  ;;  %v936_v2 = vpack.c.bf16 %v934_v63, %v934_v63 }
 0x322   : > { %v1054_v51 = vrot.slane %v1047_v48, %v2884_v9 }
 0x324   : > { %v1055_v53 = vcombine.low %v1046_v50, %v1054_v51  ;;  %v1056_v54 = vcombine.high %v1046_v50, %v1054_v51 }
 0x326   : > { %v1057_v55 = vpack.c.bf16 %v1055_v53, %v1055_v53  ;;  %v1058_v56 = vpack.c.bf16 %v1056_v54, %v1056_v54 }
 0x328   : > { %v1186_v59 = vsel %vm1181_vm2, %v1057_v55, 0  ;;  %v1232_v60 = vsel %vm1181_vm2, %v1058_v56, 0 }
 0x329   : > { %1998 = vmatpush3.bf16.xpose.msra.mxu1 %v1186_v59  ;;  %2004 = vmatpush3.bf16.xpose.msra.mxu0 %v1232_v60 }
 0x32a   : > { %2009 = vmatprep.subr.bf16.mxu1 %v2542_v16  ;;  %2015 = vmatprep.subr.bf16.mxu0 %v2542_v16 }
 0x330   : > { %2000 = vmatmul.mubr.msk.bf16.vlgmr.msra.gmra.mxu1 %vm1181_vm2, %v935_v1  ;;  %2006 = vmatmul.mubr.msk.bf16.vlgmr.msra.gmra.mxu0 %vm1181_vm2, %v936_v2 }
 0x331   : > { %2011 = vmatprep.mubr.msk.bf16.mxu1 %vm2543_vm1, %v2542_v16  ;;  %2017 = vmatprep.mubr.msk.bf16.mxu0 %vm2543_vm1, %v2542_v16 }
 0x3f0   : > { %v1222_v3 = vpop.f32.mrf.mxu1  ;;  %v1268_v4 = vpop.f32.mrf.mxu0 }
 0x3f1   : > { %v1278_v5 = vsel %vm1274_vm3, %v1268_v4, -inf  ;;  %v1275_v6 = vsel %vm1274_vm3, %v1222_v3, -inf }
 0x3f2   : > { %1279 = vmax.xlane.f32.xlu0 %v1278_v5  ;;  %v2007_v7 = vpop.f32.mrf.mxu0  ;;  %1276 = vmax.xlane.f32.xlu1 %v1275_v6  ;;  %v2001_v8 = vpop.f32.mrf.mxu1 }
 0x3f4   : > { %v1225_v10 = vpop.f32.mrf.mxu1  ;;  %v1271_v11 = vpop.f32.mrf.mxu0 }
 0x3f6   : > { %v2002_v12 = vpop.f32.mrf.mxu1  ;;  %v2008_v13 = vpop.f32.mrf.mxu0 }
 0x47b   : > { %v1280_v14 = vpop.xlane.xlu0 %1279  ;;  %v1277_v15 = vpop.xlane.xlu1 %1276 }
 0x47c   : > { %v1282_v17 = vsub.f32 %v1268_v4, %v1280_v14  ;;  %v1281_v18 = vsub.f32 %v1222_v3, %v1277_v15  ;;  %v2195_v3 = vld [vmem:[#allocation10 + $0x8] sm:$0xff]  }
 0x47e   : > { %v1285_v19 = vmul.f32 1.442695, %v1282_v17  ;;  %v1283_v20 = vmul.f32 1.442695, %v1281_v18 }
 0x480   : > { %2206 = vpow2.f32 %v1285_v19 }
 0x481   : > { %2208 = vpow2.f32 %v1283_v20 }
 0x48d   : > { %v2207_v21 = vpop.eup %2206 }
 0x48e   : > { %v2209_v22 = vpop.eup %2208  ;;  %v1290_v23 = vsel %vm1274_vm3, %v2207_v21, 0.0 }
 0x48f   : > { %1291 = vadd.xlane.f32.xlu1 %v1290_v23  ;;  %v1287_v24 = vsel %vm1274_vm3, %v2209_v22, 0.0  ;;  %v1927_v23 = vld [vmem:[#allocation11] ss:$0 sm:$0xff] }
 0x490   : > { %1288 = vadd.xlane.f32.xlu0 %v1287_v24 }
 0x4a6   : > { %1060 = vrot.lane.b32.xlu0 %v2872_v43, %s2544_s29 }
 0x518   : > { %v1292_v27 = vpop.xlane.xlu1 %1291 }
 0x519   : > { %v1289_v25 = vpop.xlane.xlu0 %1288  ;;  %2210 = vrcp.f32 %v1292_v27 }
 0x51a   : > { %2212 = vrcp.f32 %v1289_v25 }
 0x51d   : > { %v1061_v28 = vpop.permute.xlu0 %1060 }
 0x51e   : > { %v1078_v30 = vcombine.high %v1061_v28, %v2542_v16  ;;  %v1085_v31 = vrot.slane %v1061_v28, %v2876_v61 }
 0x520   : > { %v1092_v33 = vrot.slane %v1078_v30, %v2876_v61  ;;  %v1093_v34 = vcombine.low %v1070_v29, %v1085_v31  ;;  %v1094_v35 = vcombine.high %v1070_v29, %v1085_v31 }
 0x522   : > { %v1101_v36 = vrot.slane %v1093_v34, %v2884_v9  ;;  %v1108_v37 = vrot.slane %v1094_v35, %v2884_v9  ;;  %v1109_v38 = vcombine.low %v1077_v32, %v1092_v33  ;;  %v1110_v39 = vcombine.high %v1077_v32, %v1092_v33 }
 0x524   : > { %v1117_v43 = vrot.slane %v1109_v38, %v2884_v9  ;;  %v1124_v40 = vrot.slane %v1110_v39, %v2884_v9  ;;  %v1129_v41 = vcombine.low %v1101_v36, %v1108_v37  ;;  %v1917_v42 = vcombine.high %v1101_v36, %v1108_v37  ;;  %v2196_v36 = vld [vmem:[%s3058_s9 + $0x8] sm:$0xff]  }
 0x526   : > { %v1136_v44 = vrot.slane %v1129_v41, %v2876_v61  ;;  %v1144_v45 = vrot.slane %v1917_v42, %v2876_v61  ;;  %v1145_v46 = vcombine.low %v1117_v43, %v1124_v40  ;;  %v1918_v47 = vcombine.high %v1117_v43, %v1124_v40  ;;  %v2211_v52 = vpop.eup %2210  ;;  %v1928_v40 = vld [vmem:[#allocation13] ss:$0 sm:$0xff]  ;;  %v1929_v42 = vld [vmem:[#allocation14] ss:$0 sm:$0xff] }
 0x527   : > { %v2213_v55 = vpop.eup %2212  ;;  %v1296_v62 = vmul.f32 %v2211_v52, %v2207_v21 }
 0x528   : > { %v1152_v48 = vrot.slane %v1145_v46, %v2876_v61  ;;  %v1160_v49 = vrot.slane %v1918_v47, %v2876_v61  ;;  %v1161_v50 = vcombine.low %v1136_v44, %v1144_v45  ;;  %v1295_v60 = vmul.f32 %v2213_v55, %v2209_v22  ;;  %v2198_v47 = vld [vmem:[%s3060_s11 + $0x18] sm:$0xff]  }
 0x529   : > { %v1298_v2 = vpack.c.bf16 %v1296_v62, %v1296_v62 }
 0x52a   : > { %v1169_v51 = vcombine.low %v1152_v48, %v1160_v49  ;;  %v1168_v53 = vrot.slane %v1161_v50, %v2884_v9  ;;  %v1297_v61 = vpack.c.bf16 %v1295_v60, %v1295_v60  ;;  %v2199_v48 = vld [vmem:[%s3060_s11 + $0x10] sm:$0xff]   ;;  %v2200_v49 = vld [vmem:[%s3060_s11 + $0x8] sm:$0xff]   ;;  %v2201_v50 = vld [vmem:[%s3060_s11] sm:$0xff]  }
 0x52c   : > { %v1176_v54 = vrot.slane %v1169_v51, %v2884_v9  ;;  %v2194_v9 = vld [vmem:[#allocation10] sm:$0xff]   ;;  %v1930_v51 = vld [vmem:[%s3059_s10] ss:$0 sm:$0xff] }
 0x52e   : > { %v1177_v56 = vcombine.low %v1168_v53, %v1176_v54  ;;  %v1178_v57 = vcombine.high %v1168_v53, %v1176_v54 }
 0x530   : > { %v1179_v58 = vpack.c.bf16 %v1177_v56, %v1177_v56  ;;  %v1180_v59 = vpack.c.bf16 %v1178_v57, %v1178_v57 }
 0x532   : > { %v1304_v63 = vsel %vm1302_vm4, %v1179_v58, 0  ;;  %v1350_v1 = vsel %vm1302_vm4, %v1180_v59, 0 }
 0x533   : > { %2010 = vmatpush3.bf16.msra.mxu1 %v1304_v63  ;;  %2016 = vmatpush3.bf16.msra.mxu0 %v1350_v1  ;;  %v1934_v63 = vld [vmem:[%s3104_s8] ss:$0 sm:$0xff] }
 0x534   : > { %2021 = vmatprep.subr.bf16.mxu1 %v2542_v16  ;;  %2027 = vmatprep.subr.bf16.mxu0 %v2542_v16 }
 0x536   : > { %2012 = vmatmul.mubr.msk.bf16.vlgmr.msra.gmra.mxu1 %vm1274_vm3, %v1297_v61  ;;  %2018 = vmatmul.mubr.msk.bf16.vlgmr.msra.gmra.mxu0 %vm1274_vm3, %v1298_v2 }
 0x537   : > { %2023 = vmatprep.mubr.msk.bf16.mxu1 %vm2543_vm1, %v2542_v16  ;;  %2029 = vmatprep.mubr.msk.bf16.mxu0 %vm2543_vm1, %v2542_v16 }
 0x538   : > { %2022 = vmatpush3.bf16.msra.mxu1 %v2194_v9  ;;  %2028 = vmatpush3.bf16.msra.mxu0 %v2195_v3 }
 0x539   : > { %2033 = vmatprep.subr.bf16.mxu1 %v2542_v16  ;;  %2041 = vmatprep.subr.bf16.mxu0 %v2542_v16 }
 0x5f6   : > { %v1340_v4 = vpop.f32.mrf.mxu1  ;;  %v1386_v5 = vpop.f32.mrf.mxu0 }
 0x5f7   : > { %v1392_v6 = vpack.c.bf16 %v1340_v4, %v1340_v4  ;;  %v1393_v7 = vpack.c.bf16 %v1386_v5, %v1386_v5 }
 0x5f8   : > { %v2013_v8 = vpop.f32.mrf.mxu1  ;;  %v2019_v10 = vpop.f32.mrf.mxu0 }
 0x5f9   : > { %2024 = vmatmul.mubr.msk.bf16.vlgmr.msra.gmra.mxu1 %vm1181_vm2, %v1392_v6  ;;  %2030 = vmatmul.mubr.msk.bf16.vlgmr.msra.gmra.mxu0 %vm1181_vm2, %v1393_v7 }
 0x5fa   : > { %v1343_v11 = vpop.f32.mrf.mxu1  ;;  %v1389_v12 = vpop.f32.mrf.mxu0  ;;  %2037 = vmatprep.mubr.msk.bf16.mxu1 %vm2543_vm1, %v2542_v16  ;;  %2049 = vmatprep.mubr.msk.bf16.mxu0 %vm2543_vm1, %v2542_v16 }
 0x5fb   : > { %2034 = vmatpush3.bf16.msra.mxu1 %v2196_v36  ;;  %2042 = vmatpush3.bf16.msra.mxu0 %v2198_v47 }
 0x5fc   : > { %v2014_v13 = vpop.f32.mrf.mxu1  ;;  %v2020_v14 = vpop.f32.mrf.mxu0  ;;  %2035 = vmatprep.subr.bf16.mxu1 %v2542_v16  ;;  %2043 = vmatprep.subr.bf16.mxu0 %v2542_v16 }
 0x5ff   : > { %2044 = vmatpush3.bf16.msra.mxu0 %v2199_v48 }
 0x600   : > { %2045 = vmatprep.subr.bf16.mxu0 %v2542_v16 }
 0x603   : > { %2046 = vmatpush3.bf16.msra.mxu0 %v2200_v49 }
 0x604   : > { %2047 = vmatprep.subr.bf16.mxu0 %v2542_v16 }
 0x607   : > { %2048 = vmatpush3.bf16.msra.mxu0 %v2201_v50 }
 0x6b9   : > { %v1441_v15 = vpop.f32.mrf.mxu1  ;;  %v1490_v17 = vpop.f32.mrf.mxu0 }
 0x6ba   : > { %v1496_v18 = vsel %vm592_vm0, %v1441_v15, 0.0  ;;  %v1497_v19 = vsel %vm592_vm0, %v1490_v17, 0.0 }
 0x6bb   : > { %v1498_v20 = vadd.f32 %v1497_v19, %v1496_v18  ;;  %v2025_v21 = vpop.f32.mrf.mxu1  ;;  %v2031_v22 = vpop.f32.mrf.mxu0 }
 0x6bd   : > { %v1499_v24 = vadd.f32 %v1498_v20, %v2824_v0  ;;  %v1444_v25 = vpop.f32.mrf.mxu1  ;;  %v1493_v26 = vpop.f32.mrf.mxu0  ;;  %v2197_v0 = vld [vmem:[%s3058_s9] sm:$0xff]  }
 0x6be   : > { %2036 = vmatpush3.bf16.msra.mxu1 %v2197_v0 }
 0x6bf   : > { %v2026_v27 = vpop.f32.mrf.mxu1  ;;  %v2032_v28 = vpop.f32.mrf.mxu0  ;;  %v1507_v29 = vadd.f32 %v1927_v23, %v1499_v24 }
 0x6c1   : > { %v1510_v30 = vsel %vm592_vm0, %v1507_v29, 0.0 }
 0x6c2   : > { %1511 = vadd.xlane.f32.xlu1 %v1510_v30 }
 0x74b   : > { %v1512_v31 = vpop.xlane.xlu1 %1511 }
 0x74c   : > { %v1513_v32 = vmul.f32 0.03125, %v1512_v31 }
 0x74e   : > { %v1514_v33 = vsub.f32 %v1507_v29, %v1513_v32 }
 0x750   : > { %v1515_v34 = vmul.f32 %v1514_v33, %v1514_v33 }
 0x752   : > { %v1516_v35 = vsel %vm592_vm0, %v1515_v34, 0.0 }
 0x753   : > { %1517 = vadd.xlane.f32.xlu1 %v1516_v35 }
 0x7dc   : > { %v1518_v37 = vpop.xlane.xlu1 %1517 }
 0x7dd   : > { %v1519_v38 = vmul.f32 0.03125, %v1518_v37 }
 0x7df   : > { %v1520_v39 = vadd.f32 1e-05, %v1519_v38 }
 0x7e1   : > { %2214 = vrsqrt.f32 %v1520_v39 }
 0x7ee   : > { %v2215_v43 = vpop.eup %2214 }
 0x7ef   : > { %v1522_v41 = vmul.f32 %v2215_v43, %v1514_v33 }
 0x7f1   : > { %v1529_v44 = vmul.f32 %v1928_v40, %v1522_v41 }
 0x7f3   : > { %v1536_v45 = vadd.f32 %v1929_v42, %v1529_v44 }
 0x7f5   : > { %v1537_v46 = vpack.c.bf16 %v1536_v45, %v1536_v45 }
 0x7f7   : > { %2038 = vmatmul.mubr.msk.bf16.vlgmr.msra.gmra.mxu1 %vm592_vm0, %v1537_v46 }
 0x8b7   : > { %v1598_v52 = vpop.f32.mrf.mxu1 }
 0x8b8   : > { %v1599_v53 = vadd.f32 %v1930_v51, %v1598_v52 }
 0x8b9   : > { %v2039_v54 = vpop.f32.mrf.mxu1 }
 0x8ba   : > { %v1605_v55 = vmul.f32 0.70710677, %v1599_v53  ;;  %v1604_v16 = vmul.f32 0.5, %v1599_v53 }
 0x8bb   : > { %v1601_v56 = vpop.f32.mrf.mxu1 }
 0x8bc   : > { %2216 = verf.f32 %v1605_v55 }
 0x8bd   : > { %v2040_v57 = vpop.f32.mrf.mxu1 }
 0x8c9   : > { %v2217_v58 = vpop.eup %2216 }
 0x8ca   : > { %v1607_v59 = vadd.f32 1.0, %v2217_v58 }
 0x8cc   : > { %v1608_v60 = vmul.f32 %v1607_v59, %v1604_v16 }
 0x8ce   : > { %v1609_v62 = vpack.c.bf16 %v1608_v60, %v1608_v60 }
 0x8d0   : > { %2050 = vmatmul.mubr.msk.bf16.vlgmr.msra.gmra.mxu0 %vm1649_vm5, %v1609_v62 }
 0x990   : > { %v1687_v1 = vpop.f32.mrf.mxu0 }
 0x991   : > { %v1688_v61 = vadd.f32 %v1934_v63, %v1687_v1 }
 0x992   : > { %v2051_v2 = vpop.f32.mrf.mxu0 }
 0x993   : > { %v1693_v9 = vadd.f32 %v1688_v61, %v1507_v29 }
 0x994   : > { %v1690_v3 = vpop.f32.mrf.mxu0 }
 0x995   : > { %1694 = vst.msk [vmem:[%s586_s13] sm:$0xff] %vm592_vm0, %v1693_v9 }
 0x996   : > { %v2052_v4 = vpop.f32.mrf.mxu0 }
 0x997   : > { %2443 = shalt.err (!%p2440_p5)
}
 0x998   : > { %s2444_s22 = scalar_lea.hbm %s3000_s17, 128  ;;  %s2448_s18 = scalar_lea.hbm %s3105_s2, 256 }
 0x999   : > { %p2445_p10 = scmp.ne.s32.totalorder %s3000_s17, %s2444_s22  ;;  %p2449_p8 = scmp.lt.s32.totalorder %s3000_s17, %s3105_s2 }
 0x99a   : > { %p2450_p4 = scmp.lt.s32.totalorder %s2448_s18, %s2444_s22 }
 0x99b   : > { %p2446_p12 = pnand %p2445_p10, %p2746_p9 }
 0x99c   : > { %p2451_p13 = por %p2450_p4, %p2449_p8 }
 0x99d   : > { %p2447_p3 = pneg %p2446_p12 }
 0x99f   : > { %p2452_p0 = pnand %p2451_p13, %p2447_p3 }
 0x9a1   : > { %2455 = shalt.err (!%p2452_p0)
}
 0x9a2   : > { %2081 = dma.vmem_to_hbm [thread:$0]  (%p2746_p9), %s3002_s14, 128, %s3000_s17, %s1696_s28  }
 0x9a3 PF: > { %s1722_s8 = sand.u32 1, %s2510_s25   ;;  %p3106_p6 = scmp.ge.s32.totalorder %s2530_s30, 2 }
 0x9a4   : > { %s1723_s15 = scalar_lea.sflag [#allocation4], %s1722_s8 }
 0x9a5   : > { %p2110_p2 = pnand %p3106_p6, %p2753_p11 }
 0x9a7   : > { %p2111_p1 = pneg %p2110_p2 }
 0x9a9   : > { %2505 = dma.done.wait (%p2111_p1), %s1723_s15, 128  }
 0x9aa   : > { %2507 = vsyncadd (%p2111_p1), %s1723_s15, 4294967168  ;;  %s35_s30 = sadd.s32 1, %s2530_s30   ;;  %s3107_s28 = sld [smem:[#allocation24_spill]] }
 0x9ab   : > { %p32_p7 = scmp.ge.s32.totalorder %s35_s30, 4   ;;  %s3108_s29 = sld [smem:[#allocation25_spill]] }
 0x9ac   : > { %s3109_s25 = smov %s2514_s26  ;;  %s3110_s26 = smov %s2518_s27 }
 0x9ad   : > { %s3111_s27 = smov %s2751_s21  ;;  %34 = sbr.rel (!%p32_p7) target bundleno = 21 (0x15), region = 156 }
 0x9b2   :  { %1728 = vsyncpa [#allocation3], 1 }
 0x9b3   :  { %1730 = vsyncpa [#allocation3 + $0x1], 1 }
 0x9b4   :  { %1731 = vsyncpa [#allocation6], 1 }
 0x9b5   :  { %1733 = vsyncpa [#allocation6 + $0x1], 1 }
 0x9b6   :  { %1734 = vsyncpa [#allocation9], 1 }
 0x9b7   :  { %1735 = vsyncpa [#allocation12], 1 }
 0x9b8   :  { %1736 = vsyncpa [#allocation15], 1 }
 0x9b9   :  { %1737 = vsyncpa [#allocation4], 1 }
 0x9ba   :  { %1739 = vsyncpa [#allocation4 + $0x1], 1 }

</bundles_post_ra>
